<compile_context>
chip_gen: v7x
topology: tpu7x:2x2x1
jax: 0.10.0
libtpu: 0.0.40
codegen_flags: <defaults>
</compile_context>

<pallas_src>
import functools
import math

import jax
import jax.numpy as jnp
from jax import lax
from jax.experimental import pallas as pl
from jax.experimental.pallas import tpu as pltpu

_MIB = 1024 * 1024
_HEADROOM = 4 * _MIB


def _round_up(a, m):
    return (a + m - 1) // m * m


# ---------------------------------------------------------------------------
# Hardware / feature probes
# ---------------------------------------------------------------------------

def _vmem_capacity_bytes():
    """Physical VMEM per TensorCore; conservative fallback if the query fails."""
    try:
        return int(pltpu.get_tpu_info().vmem_capacity_bytes)
    except Exception:
        return 64 * _MIB  # v7x is the smallest current part


def _vmem_cap_limit(capacity):
    """Usable scoped-VMEM ceiling per generation (leave compiler headroom)."""
    if capacity >= 96 * _MIB:
        return 100 * _MIB   # v5e / v6e (128 MiB physical)
    return 56 * _MIB        # v7x (64 MiB physical per TensorCore)


@functools.lru_cache(maxsize=None)
def _single_buffer_supported():
    """Probe whether pipeline_mode=pl.Buffered(1) is accepted by pallas_call.

    Called EAGERLY once in __main__ (outside any jit) so the cached bool is
    used during tracing and no probe kernel ends up in a traced graph.
    """
    try:
        def k(x_ref, o_ref):
            o_ref[...] = x_ref[...]

        x = jnp.zeros((8, 128), jnp.float32)
        out = pl.pallas_call(
            k,
            out_shape=jax.ShapeDtypeStruct((8, 128), jnp.float32),
            grid=(1,),
            in_specs=[pl.BlockSpec((8, 128), lambda i: (0, 0),
                                   pipeline_mode=pl.Buffered(1))],
            out_specs=pl.BlockSpec((8, 128), lambda i: (0, 0)),
        )(x)
        jax.block_until_ready(out)
        return True
    except Exception:
        return False


def _const_spec(shape, index_map, single_buffer):
    """BlockSpec for a block whose index never changes across the grid."""
    if single_buffer:
        return pl.BlockSpec(shape, index_map, pipeline_mode=pl.Buffered(1))
    return pl.BlockSpec(shape, index_map)


# ---------------------------------------------------------------------------
# Kernels
# ---------------------------------------------------------------------------

def _resident_mlp_kernel(x_ref, wf_ref, bf_ref, wh_ref, bh_ref, wl_ref, bl_ref,
                         o_ref, *, num_layers, unroll):
    """All weights resident in VMEM; activation threaded as a value (no VMEM
    round-trip between layers)."""
    cdt = x_ref.dtype

    # first_linear + ReLU (MXU matmul, f32 accumulation, f32 epilogue)
    h = jnp.dot(x_ref[...], wf_ref[...], preferred_element_type=jnp.float32)
    h = jnp.maximum(h + bf_ref[...], 0.0).astype(cdt)

    if unroll:
        for l in range(num_layers):
            y = jnp.dot(h, wh_ref[l], preferred_element_type=jnp.float32)
            h = jnp.maximum(y + bh_ref[l], 0.0).astype(cdt)
    else:
        def body(l, hc):
            y = jnp.dot(hc, wh_ref[l], preferred_element_type=jnp.float32)
            return jnp.maximum(y + bh_ref[l], 0.0).astype(cdt)

        h = lax.fori_loop(0, num_layers, body, h)

    # last_linear (no activation)
    y = jnp.dot(h, wl_ref[...], preferred_element_type=jnp.float32)
    o_ref[...] = (y + bl_ref[...]).astype(o_ref.dtype)


def _streamed_mlp_kernel(x_ref, wf_ref, bf_ref, wh_ref, bh_ref, wl_ref, bl_ref,
                         o_ref, h_ref):
    """Hidden weights streamed one layer at a time over the trailing
    'arbitrary' grid axis; activation lives in a VMEM scratch that is carried
    across the layer axis.  Output is written only on the last layer step."""
    l = pl.program_id(1)

    @pl.when(l == 0)
    def _():
        h0 = jnp.dot(x_ref[...], wf_ref[...], preferred_element_type=jnp.float32)
        h_ref[...] = jnp.maximum(h0 + bf_ref[...], 0.0).astype(h_ref.dtype)

    y = jnp.dot(h_ref[...], wh_ref[0], preferred_element_type=jnp.float32)
    h_ref[...] = jnp.maximum(y + bh_ref[0], 0.0).astype(h_ref.dtype)

    @pl.when(l == pl.num_programs(1) - 1)
    def _():
        z = jnp.dot(h_ref[...], wl_ref[...], preferred_element_type=jnp.float32)
        o_ref[...] = (z + bl_ref[...]).astype(o_ref.dtype)


# ---------------------------------------------------------------------------
# Parameter construction / packing
# ---------------------------------------------------------------------------

def init_dnn_params(key, D_in, H, D_out, num_layers=2, dtype=jnp.float32):
    """PyTorch-style nn.Linear params: w is [out, in], b is [out],
    U(-1/sqrt(fan_in), +1/sqrt(fan_in))."""
    dims = [(D_in, H)] + [(H, H)] * num_layers + [(H, D_out)]
    params = []
    for fan_in, fan_out in dims:
        key, kw, kb = jax.random.split(key, 3)
        bound = 1.0 / math.sqrt(float(fan_in))
        w = jax.random.uniform(kw, (fan_out, fan_in), dtype, -bound, bound)
        b = jax.random.uniform(kb, (fan_out,), dtype, -bound, bound)
        params.append((w, b))
    return params


def prepare_fused_params(params, compute_dtype=jnp.bfloat16):
    """Transpose to [in, out], zero-pad to 128-multiples, stack hidden layers,
    cast matmul operands to `compute_dtype` (biases stay f32)."""
    assert len(params) >= 2, "need at least first + last linear"
    (w0, b0) = params[0]
    hidden = params[1:-1]
    (wl, bl) = params[-1]

    H, D_in = w0.shape
    D_out = wl.shape[0]
    num_layers = len(hidden)
    Dp_in, Hp, Dp_out = _round_up(D_in, 128), _round_up(H, 128), _round_up(D_out, 128)

    def pad2(a, rows, cols):
        return jnp.pad(a, ((0, rows - a.shape[0]), (0, cols - a.shape[1])))

    wf = pad2(w0.T, Dp_in, Hp).astype(compute_dtype)
    bf = jnp.pad(b0, (0, Hp - H)).reshape(1, Hp).astype(jnp.float32)
    if num_layers:
        wh = jnp.stack([pad2(w.T, Hp, Hp) for (w, _) in hidden]).astype(compute_dtype)
        bh = jnp.stack([jnp.pad(b, (0, Hp - H)).reshape(1, Hp) for (_, b) in hidden]
                       ).astype(jnp.float32)
    else:  # zero hidden layers: dummy (never read by the kernel)
        wh = jnp.zeros((1, Hp, Hp), compute_dtype)
        bh = jnp.zeros((1, 1, Hp), jnp.float32)
    wl_p = pad2(wl.T, Hp, Dp_out).astype(compute_dtype)
    bl_p = jnp.pad(bl, (0, Dp_out - D_out)).reshape(1, Dp_out).astype(jnp.float32)

    meta = dict(D_in=D_in, H=H, D_out=D_out, num_layers=num_layers,
                Dp_in=Dp_in, Hp=Hp, Dp_out=Dp_out)
    return (wf, bf, wh, bh, wl_p, bl_p), meta


# ---------------------------------------------------------------------------
# Forward pass
# ---------------------------------------------------------------------------

def dnn_forward_fused(fused, meta, x, *, out_dtype=jnp.float32,
                      single_buffer_weights=None, force_stream=False,
                      unroll_threshold=4):
    """Forward pass identical in semantics to DNN.forward (single fused kernel)."""
    wf, bf, wh, bh, wl, bl = fused
    B, D_in = x.shape
    assert D_in == meta["D_in"]
    Dp_in, Hp, Dp_out = meta["Dp_in"], meta["Hp"], meta["Dp_out"]
    num_layers = meta["num_layers"]
    whL = wh.shape[0]
    cdt = wf.dtype
    csize = jnp.dtype(cdt).itemsize
    osize = jnp.dtype(out_dtype).itemsize

    if single_buffer_weights is None:
        single_buffer_weights = _single_buffer_supported()
    wbuf = 1 if single_buffer_weights else 2

    capacity = _vmem_capacity_bytes()
    cap = _vmem_cap_limit(capacity)

    # Weight footprints (bytes) for the two execution modes.
    resident_w = wbuf * (csize * (Dp_in * Hp + whL * Hp * Hp + Hp * Dp_out)
                         + 4 * (Hp + whL * Hp + Dp_out))
    stream_w = (wbuf * (csize * (Dp_in * Hp + Hp * Dp_out) + 4 * (Hp + Dp_out))
                + 2 * (csize * Hp * Hp + 4 * Hp))

    min_tile = 16 if csize == 2 else 8   # bf16 packs 16 sublanes / vreg

    def tile_bytes(tm):
        # x tile (double-buffered) + out tile (double-buffered) + activation
        return (2 * tm * Dp_in * csize
                + 2 * tm * Dp_out * osize
                + tm * Hp * 4)

    use_stream = num_layers >= 1 and (
        force_stream or resident_w + tile_bytes(min_tile) + _HEADROOM > cap)
    weight_bytes = stream_w if use_stream else resident_w
    # TODO(synk): if even the streamed footprint exceeds VMEM (very large H),
    # additionally tile the Hp contraction dim; not needed at these sizes.

    # --- batch tile selection -------------------------------------------------
    avail = cap - weight_bytes - _HEADROOM
    tm = min(512, _round_up(max(B, min_tile), min_tile))
    while tm > min_tile and tile_bytes(tm) > avail:
        tm = max(min_tile, _round_up(tm // 2, min_tile))
    # If everything fits one tile, split into >=2 grid steps so v7x's second
    # TensorCore gets work (only an extra ~0.35us step on single-TC chips).
    if _round_up(B, tm) == tm:
        half = _round_up((B + 1) // 2, min_tile)
        if half < tm:
            tm = half
    TM = tm
    Bp = _round_up(B, TM)

    vmem_limit = int(min(cap, max(weight_bytes + tile_bytes(TM) + _HEADROOM,
                                  16 * _MIB)))

    xp = jnp.pad(x.astype(cdt), ((0, Bp - B), (0, Dp_in - D_in)))

    if use_stream:
        kernel = _streamed_mlp_kernel
        grid = (Bp // TM, num_layers)
        in_specs = [
            pl.BlockSpec((TM, Dp_in), lambda i, l: (i, 0)),                     # x tile
            _const_spec((Dp_in, Hp), lambda i, l: (0, 0), single_buffer_weights),
            _const_spec((1, Hp), lambda i, l: (0, 0), single_buffer_weights),
            pl.BlockSpec((1, Hp, Hp), lambda i, l: (l, 0, 0)),                  # streamed W_hidden
            pl.BlockSpec((1, 1, Hp), lambda i, l: (l, 0, 0)),                   # streamed b_hidden
            _const_spec((Hp, Dp_out), lambda i, l: (0, 0), single_buffer_weights),
            _const_spec((1, Dp_out), lambda i, l: (0, 0), single_buffer_weights),
        ]
        out_specs = pl.BlockSpec((TM, Dp_out), lambda i, l: (i, 0))
        scratch_shapes = (pltpu.VMEM((TM, Hp), cdt),)                           # carried activation
        dim_sem = ("parallel", "arbitrary")
    else:
        kernel = functools.partial(_resident_mlp_kernel, num_layers=num_layers,
                                   unroll=num_layers <= unroll_threshold)
        grid = (Bp // TM,)
        in_specs = [
            pl.BlockSpec((TM, Dp_in), lambda i: (i, 0)),                        # x tile
            _const_spec((Dp_in, Hp), lambda i: (0, 0), single_buffer_weights),
            _const_spec((1, Hp), lambda i: (0, 0), single_buffer_weights),
            _const_spec((whL, Hp, Hp), lambda i: (0, 0, 0), single_buffer_weights),
            _const_spec((whL, 1, Hp), lambda i: (0, 0, 0), single_buffer_weights),
            _const_spec((Hp, Dp_out), lambda i: (0, 0), single_buffer_weights),
            _const_spec((1, Dp_out), lambda i: (0, 0), single_buffer_weights),
        ]
        out_specs = pl.BlockSpec((TM, Dp_out), lambda i: (i, 0))
        scratch_shapes = ()
        dim_sem = ("parallel",)

    out = pl.pallas_call(
        kernel,
        out_shape=jax.ShapeDtypeStruct((Bp, Dp_out), out_dtype),
        grid=grid,
        in_specs=in_specs,
        out_specs=out_specs,
        scratch_shapes=scratch_shapes,
        compiler_params=pltpu.CompilerParams(
            dimension_semantics=dim_sem,
            vmem_limit_bytes=vmem_limit,
        ),
    )(xp, wf, bf, wh, bh, wl, bl)

    return out[:B, :meta["D_out"]]


def dnn_forward_ref(params, x, compute_dtype=jnp.float32):
    """Pure-JAX reference with the same precision policy as the kernel."""
    cdt = compute_dtype

    def lin(h, w, b):
        y = jnp.dot(h.astype(cdt), w.T.astype(cdt),
                    preferred_element_type=jnp.float32)
        return y + b.astype(jnp.float32)

    w, b = params[0]
    h = jnp.maximum(lin(x, w, b), 0.0)
    for (w, b) in params[1:-1]:
        h = jnp.maximum(lin(h, w, b), 0.0)
    w, b = params[-1]
    return lin(h, w, b)


# ---------------------------------------------------------------------------
# Demo / self-test
# ---------------------------------------------------------------------------

if __name__ == "__main__":
    compute_dtype = jnp.bfloat16  # full-rate MXU everywhere; f32 accumulation

    # Probe eagerly (outside any jit) so the cached result is used during trace.
    _single_buffer_supported()

    def run_case(case_id, D_in, H, D_out, num_layers, batch, force_stream):
        kroot = jax.random.fold_in(jax.random.PRNGKey(0), case_id)
        kx, kp = jax.random.split(kroot)
        x = jax.random.normal(kx, (batch, D_in), jnp.float32)
        params = init_dnn_params(kp, D_in, H, D_out, num_layers=num_layers)
        fused, meta = prepare_fused_params(params, compute_dtype=compute_dtype)

        fwd = jax.jit(functools.partial(dnn_forward_fused, fused, meta,
                                        force_stream=force_stream))
        out = jax.block_until_ready(fwd(x))

        ref = dnn_forward_ref(params, x, compute_dtype=compute_dtype)
        assert out.shape == (batch, D_out)
        err = float(jnp.max(jnp.abs(out - ref)))
        assert jnp.allclose(out, ref, atol=2e-3, rtol=2e-3), (case_id, err)

    # 1) Base config: resident weights, statically unrolled hidden loop.
    run_case(0, 16, 32, 8, 2, 8, force_stream=False)
    # 2) Deeper MLP: exercises the lax.fori_loop hidden-layer path.
    run_case(1, 16, 32, 8, 6, 8, force_stream=False)
    # 3) Forced weight-streaming path (layer grid axis), as used for large H.
    run_case(2, 16, 32, 8, 3, 8, force_stream=True)

    print("KERNEL_OK")
</pallas_src>

<mosaic_0001>
module attributes {stable_mosaic.version = 11 : i64} {
  func.func @k(%arg0: i32, %arg1: memref<8x128xf32, #tpu.memory_space<vmem>>, %arg2: memref<8x128xf32, #tpu.memory_space<vmem>>) attributes {dimension_semantics = [#tpu.dimension_semantics<arbitrary>], iteration_bounds = array<i64: 1>, scalar_prefetch = 0 : i64, scratch_operands = 0 : i64, tpu.core_type = #tpu.core_type<tc>, window_params = [{pipeline_mode = #tpu.pipeline_mode<synchronous>, transform_indices = @transform_0, window_bounds = array<i64: 8, 128>}, {pipeline_mode = #tpu.pipeline_mode<synchronous>, transform_indices = @transform_1, window_bounds = array<i64: 8, 128>}]} {
    %c0 = arith.constant 0 : index
    %c0_0 = arith.constant 0 : index
    %0 = vector.load %arg1[%c0, %c0_0] : memref<8x128xf32, #tpu.memory_space<vmem>>, vector<8x128xf32>
    %c0_1 = arith.constant 0 : index
    %c0_2 = arith.constant 0 : index
    %1 = vector.load %arg2[%c0_1, %c0_2] : memref<8x128xf32, #tpu.memory_space<vmem>>, vector<8x128xf32>
    tpu.vector_store %arg2[%c0_1, %c0_2], %0 {strides = array<i32>} : memref<8x128xf32, #tpu.memory_space<vmem>>, vector<8x128xf32>,
    return
  }
  func.func @transform_0(%arg0: i32) -> (i32, i32) {
    %c0_i32 = arith.constant 0 : i32
    %c0_i32_0 = arith.constant 0 : i32
    %c0_i32_1 = arith.constant 0 : i32
    return %c0_i32, %c0_i32_0 : i32, i32
  }
  func.func @transform_1(%arg0: i32) -> (i32, i32) {
    %c0_i32 = arith.constant 0 : i32
    %c0_i32_0 = arith.constant 0 : i32
    %c0_i32_1 = arith.constant 0 : i32
    return %c0_i32, %c0_i32_0 : i32, i32
  }
}

module attributes {stable_mosaic.version = 11 : i64} {
  func.func @_resident_mlp_kernel(%arg0: i32, %arg1: memref<16x128xbf16, #tpu.memory_space<vmem>>, %arg2: memref<128x128xbf16, #tpu.memory_space<vmem>>, %arg3: memref<1x128xf32, #tpu.memory_space<vmem>>, %arg4: memref<2x128x128xbf16, #tpu.memory_space<vmem>>, %arg5: memref<2x1x128xf32, #tpu.memory_space<vmem>>, %arg6: memref<128x128xbf16, #tpu.memory_space<vmem>>, %arg7: memref<1x128xf32, #tpu.memory_space<vmem>>, %arg8: memref<16x128xf32, #tpu.memory_space<vmem>>) attributes {dimension_semantics = [#tpu.dimension_semantics<parallel>], iteration_bounds = array<i64: 1>, scalar_prefetch = 0 : i64, scratch_operands = 0 : i64, tpu.core_type = #tpu.core_type<tc>, window_params = [{transform_indices = @transform_0, window_bounds = array<i64: 16, 128>}, {pipeline_mode = #tpu.pipeline_mode<synchronous>, transform_indices = @transform_1, window_bounds = array<i64: 128, 128>}, {pipeline_mode = #tpu.pipeline_mode<synchronous>, transform_indices = @transform_2, window_bounds = array<i64: 1, 128>}, {pipeline_mode = #tpu.pipeline_mode<synchronous>, transform_indices = @transform_3, window_bounds = array<i64: 2, 128, 128>}, {pipeline_mode = #tpu.pipeline_mode<synchronous>, transform_indices = @transform_4, window_bounds = array<i64: 2, 1, 128>}, {pipeline_mode = #tpu.pipeline_mode<synchronous>, transform_indices = @transform_5, window_bounds = array<i64: 128, 128>}, {pipeline_mode = #tpu.pipeline_mode<synchronous>, transform_indices = @transform_6, window_bounds = array<i64: 1, 128>}, {transform_indices = @transform_7, window_bounds = array<i64: 16, 128>}]} {
    %c0 = arith.constant 0 : index
    %c0_0 = arith.constant 0 : index
    %0 = vector.load %arg1[%c0, %c0_0] : memref<16x128xbf16, #tpu.memory_space<vmem>>, vector<16x128xbf16>
    %c0_1 = arith.constant 0 : index
    %c0_2 = arith.constant 0 : index
    %1 = vector.load %arg2[%c0_1, %c0_2] : memref<128x128xbf16, #tpu.memory_space<vmem>>, vector<128x128xbf16>
    %cst = arith.constant dense<0.000000e+00> : vector<16x128xf32>
    %2 = tpu.matmul %0, %1, %cst {dimension_numbers = #tpu.dot_dimension_numbers<[1], [0], [0], [1], [0, 0, 1, 1], [], []>} : vector<16x128xbf16>, vector<128x128xbf16>, vector<16x128xf32> -> vector<16x128xf32>
    %c0_3 = arith.constant 0 : index
    %c0_4 = arith.constant 0 : index
    %3 = vector.load %arg3[%c0_3, %c0_4] : memref<1x128xf32, #tpu.memory_space<vmem>>, vector<1x128xf32>
    %4 = vector.broadcast %3 : vector<1x128xf32> to vector<16x128xf32>
    %5 = arith.addf %2, %4 : vector<16x128xf32>
    %cst_5 = arith.constant 0.000000e+00 : f32
    %6 = vector.broadcast %cst_5 : f32 to vector<16x128xf32>
    %7 = arith.maximumf %5, %6 : vector<16x128xf32>
    %8 = arith.truncf %7 : vector<16x128xf32> to vector<16x128xbf16>
    %c0_6 = arith.constant 0 : index
    %c0_7 = arith.constant 0 : index
    %c0_8 = arith.constant 0 : index
    %9 = vector.load %arg4[%c0_6, %c0_7, %c0_8] : memref<2x128x128xbf16, #tpu.memory_space<vmem>>, vector<1x128x128xbf16>
    %10 = vector.shape_cast %9 : vector<1x128x128xbf16> to vector<128x128xbf16>
    %cst_9 = arith.constant dense<0.000000e+00> : vector<16x128xf32>
    %11 = tpu.matmul %8, %10, %cst_9 {dimension_numbers = #tpu.dot_dimension_numbers<[1], [0], [0], [1], [0, 0, 1, 1], [], []>} : vector<16x128xbf16>, vector<128x128xbf16>, vector<16x128xf32> -> vector<16x128xf32>
    %c0_10 = arith.constant 0 : index
    %c0_11 = arith.constant 0 : index
    %c0_12 = arith.constant 0 : index
    %12 = vector.load %arg5[%c0_10, %c0_11, %c0_12] : memref<2x1x128xf32, #tpu.memory_space<vmem>>, vector<1x1x128xf32>
    %13 = vector.shape_cast %12 : vector<1x1x128xf32> to vector<1x128xf32>
    %14 = vector.broadcast %13 : vector<1x128xf32> to vector<16x128xf32>
    %15 = arith.addf %11, %14 : vector<16x128xf32>
    %cst_13 = arith.constant 0.000000e+00 : f32
    %16 = vector.broadcast %cst_13 : f32 to vector<16x128xf32>
    %17 = arith.maximumf %15, %16 : vector<16x128xf32>
    %18 = arith.truncf %17 : vector<16x128xf32> to vector<16x128xbf16>
    %c1 = arith.constant 1 : index
    %c0_14 = arith.constant 0 : index
    %c0_15 = arith.constant 0 : index
    %19 = vector.load %arg4[%c1, %c0_14, %c0_15] : memref<2x128x128xbf16, #tpu.memory_space<vmem>>, vector<1x128x128xbf16>
    %20 = vector.shape_cast %19 : vector<1x128x128xbf16> to vector<128x128xbf16>
    %cst_16 = arith.constant dense<0.000000e+00> : vector<16x128xf32>
    %21 = tpu.matmul %18, %20, %cst_16 {dimension_numbers = #tpu.dot_dimension_numbers<[1], [0], [0], [1], [0, 0, 1, 1], [], []>} : vector<16x128xbf16>, vector<128x128xbf16>, vector<16x128xf32> -> vector<16x128xf32>
    %c1_17 = arith.constant 1 : index
    %c0_18 = arith.constant 0 : index
    %c0_19 = arith.constant 0 : index
    %22 = vector.load %arg5[%c1_17, %c0_18, %c0_19] : memref<2x1x128xf32, #tpu.memory_space<vmem>>, vector<1x1x128xf32>
    %23 = vector.shape_cast %22 : vector<1x1x128xf32> to vector<1x128xf32>
    %24 = vector.broadcast %23 : vector<1x128xf32> to vector<16x128xf32>
    %25 = arith.addf %21, %24 : vector<16x128xf32>
    %cst_20 = arith.constant 0.000000e+00 : f32
    %26 = vector.broadcast %cst_20 : f32 to vector<16x128xf32>
    %27 = arith.maximumf %25, %26 : vector<16x128xf32>
    %28 = arith.truncf %27 : vector<16x128xf32> to vector<16x128xbf16>
    %c0_21 = arith.constant 0 : index
    %c0_22 = arith.constant 0 : index
    %29 = vector.load %arg6[%c0_21, %c0_22] : memref<128x128xbf16, #tpu.memory_space<vmem>>, vector<128x128xbf16>
    %cst_23 = arith.constant dense<0.000000e+00> : vector<16x128xf32>
    %30 = tpu.matmul %28, %29, %cst_23 {dimension_numbers = #tpu.dot_dimension_numbers<[1], [0], [0], [1], [0, 0, 1, 1], [], []>} : vector<16x128xbf16>, vector<128x128xbf16>, vector<16x128xf32> -> vector<16x128xf32>
    %c0_24 = arith.constant 0 : index
    %c0_25 = arith.constant 0 : index
    %31 = vector.load %arg7[%c0_24, %c0_25] : memref<1x128xf32, #tpu.memory_space<vmem>>, vector<1x128xf32>
    %32 = vector.broadcast %31 : vector<1x128xf32> to vector<16x128xf32>
    %33 = arith.addf %30, %32 : vector<16x128xf32>
    %c0_26 = arith.constant 0 : index
    %c0_27 = arith.constant 0 : index
    %34 = vector.load %arg8[%c0_26, %c0_27] : memref<16x128xf32, #tpu.memory_space<vmem>>, vector<16x128xf32>
    tpu.vector_store %arg8[%c0_26, %c0_27], %33 {strides = array<i32>} : memref<16x128xf32, #tpu.memory_space<vmem>>, vector<16x128xf32>,
    return
  }
  func.func @transform_0(%arg0: i32) -> (i32, i32) {
    %c0_i32 = arith.constant 0 : i32
    %c0_i32_0 = arith.constant 0 : i32
    return %arg0, %c0_i32 : i32, i32
  }
  func.func @transform_1(%arg0: i32) -> (i32, i32) {
    %c0_i32 = arith.constant 0 : i32
    %c0_i32_0 = arith.constant 0 : i32
    %c0_i32_1 = arith.constant 0 : i32
    return %c0_i32, %c0_i32_0 : i32, i32
  }
  func.func @transform_2(%arg0: i32) -> (i32, i32) {
    %c0_i32 = arith.constant 0 : i32
    %c0_i32_0 = arith.constant 0 : i32
    %c0_i32_1 = arith.constant 0 : i32
    return %c0_i32, %c0_i32_0 : i32, i32
  }
  func.func @transform_3(%arg0: i32) -> (i32, i32, i32) {
    %c0_i32 = arith.constant 0 : i32
    %c0_i32_0 = arith.constant 0 : i32
    %c0_i32_1 = arith.constant 0 : i32
    %c0_i32_2 = arith.constant 0 : i32
    return %c0_i32, %c0_i32_0, %c0_i32_1 : i32, i32, i32
  }
  func.func @transform_4(%arg0: i32) -> (i32, i32, i32) {
    %c0_i32 = arith.constant 0 : i32
    %c0_i32_0 = arith.constant 0 : i32
    %c0_i32_1 = arith.constant 0 : i32
    %c0_i32_2 = arith.constant 0 : i32
    return %c0_i32, %c0_i32_0, %c0_i32_1 : i32, i32, i32
  }
  func.func @transform_5(%arg0: i32) -> (i32, i32) {
    %c0_i32 = arith.constant 0 : i32
    %c0_i32_0 = arith.constant 0 : i32
    %c0_i32_1 = arith.constant 0 : i32
    return %c0_i32, %c0_i32_0 : i32, i32
  }
  func.func @transform_6(%arg0: i32) -> (i32, i32) {
    %c0_i32 = arith.constant 0 : i32
    %c0_i32_0 = arith.constant 0 : i32
    %c0_i32_1 = arith.constant 0 : i32
    return %c0_i32, %c0_i32_0 : i32, i32
  }
  func.func @transform_7(%arg0: i32) -> (i32, i32) {
    %c0_i32 = arith.constant 0 : i32
    %c0_i32_0 = arith.constant 0 : i32
    return %arg0, %c0_i32 : i32, i32
  }
}

</mosaic_0001>

<bundles_post_ra>
// kernel: tpu_custom_call.1
= control target key start
LH: loop header
LB: loop body
LE: loop exit
PB: predicated region body
PF: predicated region fallthrough
CT: control target
= control target key end

     0   :  { %6 = vsyncpa [#allocation3], 0  ;;  %s124_s0 = inlined_call_operand.hbm [shape: f32[8,128], index: 0, kind: input, shape index: {}]   ;;  %s125_s1 = inlined_call_operand.hbm [shape: f32[8,128], index: 1, kind: output, shape index: {}]  }
   0x1   :  { %7 = vsyncpa [#allocation4], 0  ;;  %s88_s6 = smov [#allocation2]   ;;  %s40_s10 = scalar_lea.hbm %s124_s0, 128 }
   0x2   :  { %s14_s7 = sshll.u32 %s88_s6, 4  ;;  %p41_p0 = scmp.ne.s32.totalorder %s124_s0, %s40_s10  ;;  %s15_s7 = int_to_ptr.vmem [resolvable:$true] %s14_s7 }
   0x3   :  { %p44_p1 = scmp.lt.u32.totalorder %s40_s10, %s124_s0 }
   0x5   :  { %p46_p2 = pnand %p44_p1, %p41_p0 }
   0x7   :  { %49 = shalt.err (!%p46_p2)
}
   0x8   :  { %s50_s15 = scalar_lea.vmem %s15_s7, 128  ;;  %p55_p4 = scmp.lt.s32.totalorder %s15_s7, %s15_s7 }
   0x9   :  { %p51_p3 = scmp.ne.s32.totalorder %s15_s7, %s50_s15  ;;  %p56_p5 = scmp.lt.s32.totalorder %s50_s15, %s50_s15 }
   0xb   :  { %p57_p6 = por %p56_p5, %p55_p4 }
   0xd   :  { %p58_p7 = pnand %p57_p6, %p51_p3 }
   0xf   :  { %61 = shalt.err (!%p58_p7)
}
  0x10   :  { %17 = dma.hbm_to_vmem [thread:$0]  %s124_s0, 128, %s15_s7, [#allocation3]  }
  0x11   :  { %84 = dma.done.wait [#allocation3], 128  }
  0x12   :  { %85 = vsyncadd [#allocation3], 4294967168  ;;  %s89_s18 = smov [#allocation5]   ;;  %v21_v0 = vld [vmem:[#allocation2] sm:$0xff] }
  0x13   :  { %s29_s19 = sshll.u32 %s89_s18, 4  ;;  %22 = vst [vmem:[#allocation5] sm:$0xff] %v21_v0  ;;  %s30_s19 = int_to_ptr.vmem [resolvable:$true] %s29_s19 }
  0x14   :  { %s62_s20 = scalar_lea.vmem %s30_s19, 128  ;;  %p67_p9 = scmp.lt.s32.totalorder %s30_s19, %s30_s19 }
  0x15   :  { %p63_p8 = scmp.ne.s32.totalorder %s30_s19, %s62_s20  ;;  %p68_p10 = scmp.lt.s32.totalorder %s62_s20, %s62_s20 }
  0x17   :  { %p69_p11 = por %p68_p10, %p67_p9 }
  0x19   :  { %p70_p12 = pnand %p69_p11, %p63_p8 }
  0x1b   :  { %73 = shalt.err (!%p70_p12)
}
  0x1c   :  { %s74_s23 = scalar_lea.hbm %s125_s1, 128 }
  0x1d   :  { %p75_p13 = scmp.ne.s32.totalorder %s125_s1, %s74_s23  ;;  %p78_p0 = scmp.lt.u32.totalorder %s74_s23, %s125_s1 }
  0x1f   :  { %p80_p1 = pnand %p78_p0, %p75_p13 }
  0x21   :  { %83 = shalt.err (!%p80_p1)
}
  0x22   :  { %32 = dma.vmem_to_hbm [thread:$0]  %s30_s19, 128, %s125_s1, [#allocation4]  }
  0x23   :  { %86 = dma.done.wait [#allocation4], 128  }
  0x24   :  { %87 = vsyncadd [#allocation4], 4294967168 }
  0x25   :  { %36 = vsyncpa [#allocation3], 1 }
  0x26   :  { %37 = vsyncpa [#allocation4], 1 }

// kernel: dnn_forward_fused.1
= control target key start
LH: loop header
LB: loop body
LE: loop exit
PB: predicated region body
PF: predicated region fallthrough
CT: control target
= control target key end

     0   :  { %12 = vsyncpa [#allocation3], 0  ;;  %s967_s0 = inlined_call_operand.vmem [shape: bf16[16,128], index: 0, kind: input, shape index: {}]   ;;  %s968_s1 = inlined_call_operand.hbm [shape: bf16[128,128], index: 1, kind: input, shape index: {}]   ;;  %s969_s2 = inlined_call_operand.vmem [shape: f32[1,128], index: 2, kind: input, shape index: {}]   ;;  %s970_s3 = inlined_call_operand.hbm [shape: bf16[2,128,128], index: 3, kind: input, shape index: {}]   ;;  %s971_s4 = inlined_call_operand.vmem [shape: f32[2,1,128], index: 4, kind: input, shape index: {}]   ;;  %s972_s5 = inlined_call_operand.hbm [shape: bf16[128,128], index: 5, kind: input, shape index: {}]   ;;  %s973_s6 = inlined_call_operand.vmem [shape: f32[1,128], index: 6, kind: input, shape index: {}]   ;;  %s974_s7 = inlined_call_operand.vmem [shape: f32[16,128], index: 7, kind: output, shape index: {}]  }
   0x1   :  { %13 = vsyncpa [#allocation5], 0  ;;  %s807_s24 = smov [#allocation4]   ;;  %s808_s26 = smov [#allocation2]  }
   0x2   :  { %s35_s25 = sshll.u32 %s807_s24, 4  ;;  %s21_s27 = sshll.u32 %s808_s26, 4  ;;  %s36_s25 = int_to_ptr.vmem [resolvable:$true] %s35_s25  ;;  %s854_s27 = int_to_ptr.vmem [resolvable:$true] %s21_s27 }
   0x3   :  { %s737_s30 = scalar_lea.hbm %s970_s3, 2048 }
   0x4   :  { %p738_p0 = scmp.ne.s32.totalorder %s970_s3, %s737_s30  ;;  %p741_p1 = scmp.lt.u32.totalorder %s737_s30, %s970_s3 }
   0x6   :  { %p743_p2 = pnand %p741_p1, %p738_p0 }
   0x8   :  { %746 = shalt.err (!%p743_p2)
}
   0x9   :  { %s747_s12 = scalar_lea.vmem %s36_s25, 2048  ;;  %p752_p4 = scmp.lt.s32.totalorder %s36_s25, %s36_s25 }
   0xa   :  { %p748_p3 = scmp.ne.s32.totalorder %s36_s25, %s747_s12  ;;  %p753_p5 = scmp.lt.s32.totalorder %s747_s12, %s747_s12 }
   0xc   :  { %p754_p6 = por %p753_p5, %p752_p4 }
   0xe   :  { %p755_p7 = pnand %p754_p6, %p748_p3 }
  0x10   :  { %758 = shalt.err (!%p755_p7)
}
  0x11   :  { %s809_s13 = smov 64   ;;  %s810_s14 = smov 4  }
  0x12   :  { %41 = dma.hbm_to_vmem [thread:$0]  %s970_s3, 2048, %s36_s25, [#allocation5], %s809_s13, %s809_s13, %s810_s14  }
  0x13   :  { %s759_s19 = scalar_lea.hbm %s968_s1, 1024 }
  0x14   :  { %p760_p8 = scmp.ne.s32.totalorder %s968_s1, %s759_s19  ;;  %p763_p9 = scmp.lt.u32.totalorder %s759_s19, %s968_s1 }
  0x16   :  { %p765_p10 = pnand %p763_p9, %p760_p8 }
  0x18   :  { %768 = shalt.err (!%p765_p10)
}
  0x19   :  { %s769_s24 = scalar_lea.vmem %s854_s27, 1024  ;;  %p774_p12 = scmp.lt.s32.totalorder %s854_s27, %s854_s27 }
  0x1a   :  { %p770_p11 = scmp.ne.s32.totalorder %s854_s27, %s769_s24  ;;  %p775_p13 = scmp.lt.s32.totalorder %s769_s24, %s769_s24 }
  0x1c   :  { %p776_p0 = por %p775_p13, %p774_p12 }
  0x1e   :  { %p777_p1 = pnand %p776_p0, %p770_p11 }
  0x20   :  { %780 = shalt.err (!%p777_p1)
}
  0x21   :  { %27 = dma.hbm_to_vmem [thread:$0]  %s968_s1, 1024, %s854_s27, [#allocation3], %s809_s13, %s809_s13, %s810_s14  }
  0x22   :  { %s811_s26 = smov [#allocation6]   ;;  %s781_s8 = scalar_lea.hbm %s972_s5, 1024 }
  0x23   :  { %s49_s28 = sshll.u32 %s811_s26, 4  ;;  %p782_p2 = scmp.ne.s32.totalorder %s972_s5, %s781_s8  ;;  %s50_s28 = int_to_ptr.vmem [resolvable:$true] %s49_s28 }
  0x24   :  { %p785_p3 = scmp.lt.u32.totalorder %s781_s8, %s972_s5 }
  0x26   :  { %p787_p4 = pnand %p785_p3, %p782_p2 }
  0x28   :  { %790 = shalt.err (!%p787_p4)
}
  0x29   :  { %s791_s15 = scalar_lea.vmem %s50_s28, 1024  ;;  %p796_p6 = scmp.lt.s32.totalorder %s50_s28, %s50_s28 }
  0x2a   :  { %p792_p5 = scmp.ne.s32.totalorder %s50_s28, %s791_s15  ;;  %p797_p7 = scmp.lt.s32.totalorder %s791_s15, %s791_s15 }
  0x2c   :  { %p798_p8 = por %p797_p7, %p796_p6 }
  0x2e   :  { %p799_p9 = pnand %p798_p8, %p792_p5 }
  0x30   :  { %802 = shalt.err (!%p799_p9)
}
  0x31   :  { %55 = dma.hbm_to_vmem [thread:$0]  %s972_s5, 1024, %s50_s28, [#allocation5], %s809_s13, %s809_s13, %s810_s14  }
  0x32   :  { %803 = dma.done.wait [#allocation3], 1024  }
  0x33   :  { %804 = vsyncadd [#allocation3], 4294966272 }
  0x34   :  { %805 = dma.done.wait [#allocation5], 3072  }
  0x35   :  { %806 = vsyncadd [#allocation5], 4294964224  ;;  %v812_v0 = vmov 0.0   ;;  %vm813_vm0 = vmmov 0   ;;  %v704_v1 = vld [vmem:[#allocation2] sm:$0xff]   ;;  %v705_v2 = vld [vmem:[#allocation2 + $0x8] sm:$0xff]  }
  0x36   :  { %617 = vmatprep.subr.bf16.mxu0 %v812_v0  ;;  %633 = vmatprep.mubr.msk.bf16.mxu0 %vm813_vm0, %v812_v0  ;;  %v706_v3 = vld [vmem:[#allocation2 + $0x10] sm:$0xff]   ;;  %v713_v4 = vld [vmem:[#allocation4] sm:$0xff]   ;;  %v707_v5 = vld [vmem:[#allocation2 + $0x18] sm:$0xff]  }
  0x37   :  { %637 = vmatprep.subr.bf16.mxu1 %v812_v0  ;;  %653 = vmatprep.mubr.msk.bf16.mxu1 %vm813_vm0, %v812_v0  ;;  %v714_v6 = vld [vmem:[#allocation4 + $0x8] sm:$0xff]   ;;  %v708_v7 = vld [vmem:[#allocation2 + $0x20] sm:$0xff]   ;;  %v715_v8 = vld [vmem:[#allocation4 + $0x10] sm:$0xff]  }
  0x38   :  { %618 = vmatpush3.bf16.msra.mxu0 %v704_v1  ;;  %638 = vmatpush3.bf16.msra.mxu1 %v713_v4  ;;  %v709_v9 = vld [vmem:[#allocation2 + $0x28] sm:$0xff]   ;;  %v716_v10 = vld [vmem:[#allocation4 + $0x18] sm:$0xff]   ;;  %v710_v11 = vld [vmem:[#allocation2 + $0x30] sm:$0xff]  }
  0x39   :  { %619 = vmatprep.subr.bf16.mxu0 %v812_v0  ;;  %639 = vmatprep.subr.bf16.mxu1 %v812_v0  ;;  %v717_v12 = vld [vmem:[#allocation4 + $0x20] sm:$0xff]   ;;  %v711_v13 = vld [vmem:[#allocation2 + $0x38] sm:$0xff]   ;;  %v718_v14 = vld [vmem:[#allocation4 + $0x28] sm:$0xff]  }
  0x3a   :  { %v712_v15 = vld [vmem:[%s967_s0] sm:$0xff]   ;;  %v719_v16 = vld [vmem:[#allocation4 + $0x30] sm:$0xff]   ;;  %v720_v17 = vld [vmem:[#allocation4 + $0x38] sm:$0xff]  }
  0x3b   :  { %v721_v18 = vld [vmem:[#allocation4 + $0x40] sm:$0xff]   ;;  %v722_v19 = vld [vmem:[#allocation4 + $0x48] sm:$0xff]   ;;  %v723_v20 = vld [vmem:[#allocation4 + $0x50] sm:$0xff]  }
  0x3c   :  { %620 = vmatpush3.bf16.msra.mxu0 %v705_v2  ;;  %640 = vmatpush3.bf16.msra.mxu1 %v714_v6  ;;  %v724_v21 = vld [vmem:[#allocation4 + $0x58] sm:$0xff]   ;;  %v725_v22 = vld [vmem:[#allocation4 + $0x60] sm:$0xff]   ;;  %v726_v23 = vld [vmem:[#allocation4 + $0x68] sm:$0xff]  }
  0x3d   :  { %621 = vmatprep.subr.bf16.mxu0 %v812_v0  ;;  %641 = vmatprep.subr.bf16.mxu1 %v812_v0  ;;  %v543_v24 = vld [vmem:[%s969_s2] ss:$0 sm:$0xff]  ;;  %v727_v34 = vld [vmem:[#allocation4 + $0x70] sm:$0xff]   ;;  %v728_v35 = vld [vmem:[#allocation4 + $0x78] sm:$0xff]  }
  0x3e   :  { %v729_v36 = vld [vmem:[#allocation6] sm:$0xff]   ;;  %v730_v37 = vld [vmem:[#allocation6 + $0x8] sm:$0xff]   ;;  %v731_v38 = vld [vmem:[#allocation6 + $0x10] sm:$0xff]  }
  0x3f   :  { %v732_v39 = vld [vmem:[#allocation6 + $0x18] sm:$0xff]   ;;  %v733_v40 = vld [vmem:[#allocation6 + $0x20] sm:$0xff]   ;;  %v734_v41 = vld [vmem:[#allocation6 + $0x28] sm:$0xff]  }
  0x40   :  { %622 = vmatpush3.bf16.msra.mxu0 %v706_v3  ;;  %642 = vmatpush3.bf16.msra.mxu1 %v715_v8  ;;  %v553_v42 = vld [vmem:[%s971_s4] ss:$0 sm:$0xff]  ;;  %v735_v52 = vld [vmem:[#allocation6 + $0x30] sm:$0xff]   ;;  %v736_v53 = vld [vmem:[#allocation6 + $0x38] sm:$0xff]  }
  0x41   :  { %623 = vmatprep.subr.bf16.mxu0 %v812_v0  ;;  %643 = vmatprep.subr.bf16.mxu1 %v812_v0  ;;  %v563_v54 = vld [vmem:[%s971_s4 + $0x1] ss:$0 sm:$0xff] }
  0x44   :  { %624 = vmatpush3.bf16.msra.mxu0 %v707_v5  ;;  %644 = vmatpush3.bf16.msra.mxu1 %v716_v10 }
  0x45   :  { %625 = vmatprep.subr.bf16.mxu0 %v812_v0  ;;  %645 = vmatprep.subr.bf16.mxu1 %v812_v0 }
  0x48   :  { %626 = vmatpush3.bf16.msra.mxu0 %v708_v7  ;;  %646 = vmatpush3.bf16.msra.mxu1 %v717_v12 }
  0x49   :  { %627 = vmatprep.subr.bf16.mxu0 %v812_v0  ;;  %647 = vmatprep.subr.bf16.mxu1 %v812_v0 }
  0x4c   :  { %628 = vmatpush3.bf16.msra.mxu0 %v709_v9  ;;  %648 = vmatpush3.bf16.msra.mxu1 %v718_v14 }
  0x4d   :  { %629 = vmatprep.subr.bf16.mxu0 %v812_v0  ;;  %649 = vmatprep.subr.bf16.mxu1 %v812_v0 }
  0x50   :  { %630 = vmatpush3.bf16.msra.mxu0 %v710_v11  ;;  %650 = vmatpush3.bf16.msra.mxu1 %v719_v16 }
  0x51   :  { %631 = vmatprep.subr.bf16.mxu0 %v812_v0  ;;  %651 = vmatprep.subr.bf16.mxu1 %v812_v0 }
  0x54   :  { %632 = vmatpush3.bf16.msra.mxu0 %v711_v13  ;;  %652 = vmatpush3.bf16.msra.mxu1 %v720_v17 }
  0x55   :  { %657 = vmatprep.subr.bf16.mxu0 %v812_v0  ;;  %677 = vmatprep.subr.bf16.mxu1 %v812_v0 }
  0x57   :  { %634 = vmatmul.mubr.bf16.vlgmr.msra.gmra.mrb[0].mxu0 %v712_v15 }
  0x58   :  { %673 = vmatprep.mubr.msk.bf16.mxu0 %vm813_vm0, %v812_v0  ;;  %658 = vmatpush3.bf16.msra.mxu0 %v721_v18 }
  0x59   :  { %659 = vmatprep.subr.bf16.mxu0 %v812_v0 }
  0x5c   :  { %660 = vmatpush3.bf16.msra.mxu0 %v722_v19 }
  0x5d   :  { %661 = vmatprep.subr.bf16.mxu0 %v812_v0 }
  0x60   :  { %662 = vmatpush3.bf16.msra.mxu0 %v723_v20 }
  0x61   :  { %663 = vmatprep.subr.bf16.mxu0 %v812_v0 }
  0x64   :  { %664 = vmatpush3.bf16.msra.mxu0 %v724_v21 }
  0x65   :  { %665 = vmatprep.subr.bf16.mxu0 %v812_v0 }
  0x68   :  { %666 = vmatpush3.bf16.msra.mxu0 %v725_v22 }
  0x69   :  { %667 = vmatprep.subr.bf16.mxu0 %v812_v0 }
  0x6c   :  { %668 = vmatpush3.bf16.msra.mxu0 %v726_v23 }
  0x6d   :  { %669 = vmatprep.subr.bf16.mxu0 %v812_v0 }
  0x70   :  { %670 = vmatpush3.bf16.msra.mxu0 %v727_v34 }
  0x71   :  { %671 = vmatprep.subr.bf16.mxu0 %v812_v0 }
  0x74   :  { %672 = vmatpush3.bf16.msra.mxu0 %v728_v35 }
 0x12a   :  { %v181_v25 = vpop.f32.mrb[0].mxu0 }
 0x12b   :  { %v182_v26 = vadd.f32 %v543_v24, %v181_v25  ;;  %v635_v27 = vpop.f32.mrb[1].mxu0 }
 0x12c   :  { %v184_v28 = vpop.f32.mrb[2].mxu0 }
 0x12d   :  { %v185_v29 = vadd.f32 %v543_v24, %v184_v28  ;;  %v636_v30 = vpop.f32.mrb[3].mxu0  ;;  %v188_v31 = vmax.f32 %v182_v26, 0.0 }
 0x12f   :  { %v189_v32 = vmax.f32 %v185_v29, 0.0 }
 0x131   :  { %v190_v33 = vpack.c.bf16 %v189_v32, %v188_v31 }
 0x133   :  { %654 = vmatmul.mubr.bf16.vlgmr.msra.gmra.mrb[0].mxu1 %v190_v33 }
 0x134   :  { %693 = vmatprep.mubr.msk.bf16.mxu1 %vm813_vm0, %v812_v0  ;;  %678 = vmatpush3.bf16.msra.mxu1 %v729_v36 }
 0x135   :  { %679 = vmatprep.subr.bf16.mxu1 %v812_v0 }
 0x138   :  { %680 = vmatpush3.bf16.msra.mxu1 %v730_v37 }
 0x139   :  { %681 = vmatprep.subr.bf16.mxu1 %v812_v0 }
 0x13c   :  { %682 = vmatpush3.bf16.msra.mxu1 %v731_v38 }
 0x13d   :  { %683 = vmatprep.subr.bf16.mxu1 %v812_v0 }
 0x140   :  { %684 = vmatpush3.bf16.msra.mxu1 %v732_v39 }
 0x141   :  { %685 = vmatprep.subr.bf16.mxu1 %v812_v0 }
 0x144   :  { %686 = vmatpush3.bf16.msra.mxu1 %v733_v40 }
 0x145   :  { %687 = vmatprep.subr.bf16.mxu1 %v812_v0 }
 0x148   :  { %688 = vmatpush3.bf16.msra.mxu1 %v734_v41 }
 0x149   :  { %689 = vmatprep.subr.bf16.mxu1 %v812_v0 }
 0x14c   :  { %690 = vmatpush3.bf16.msra.mxu1 %v735_v52 }
 0x14d   :  { %691 = vmatprep.subr.bf16.mxu1 %v812_v0  ;;  %v572_v0 = vld [vmem:[%s973_s6] ss:$0 sm:$0xff] }
 0x150   :  { %692 = vmatpush3.bf16.msra.mxu1 %v736_v53 }
 0x206   :  { %v296_v43 = vpop.f32.mrb[0].mxu1 }
 0x207   :  { %v297_v44 = vadd.f32 %v553_v42, %v296_v43  ;;  %v655_v45 = vpop.f32.mrb[1].mxu1 }
 0x208   :  { %v299_v46 = vpop.f32.mrb[2].mxu1 }
 0x209   :  { %v300_v47 = vadd.f32 %v553_v42, %v299_v46  ;;  %v656_v48 = vpop.f32.mrb[3].mxu1  ;;  %v303_v49 = vmax.f32 %v297_v44, 0.0 }
 0x20b   :  { %v304_v50 = vmax.f32 %v300_v47, 0.0 }
 0x20d   :  { %v305_v51 = vpack.c.bf16 %v304_v50, %v303_v49 }
 0x20f   :  { %674 = vmatmul.mubr.bf16.vlgmr.msra.gmra.mrb[4].mxu0 %v305_v51 }
 0x2e2   :  { %v413_v55 = vpop.f32.mrb[4].mxu0 }
 0x2e3   :  { %v414_v56 = vadd.f32 %v563_v54, %v413_v55  ;;  %v675_v57 = vpop.f32.mrb[5].mxu0 }
 0x2e4   :  { %v416_v58 = vpop.f32.mrb[6].mxu0 }
 0x2e5   :  { %v417_v59 = vadd.f32 %v563_v54, %v416_v58  ;;  %v676_v60 = vpop.f32.mrb[7].mxu0  ;;  %v420_v61 = vmax.f32 %v414_v56, 0.0 }
 0x2e7   :  { %v421_v62 = vmax.f32 %v417_v59, 0.0 }
 0x2e9   :  { %v422_v63 = vpack.c.bf16 %v421_v62, %v420_v61 }
 0x2eb   :  { %694 = vmatmul.mubr.bf16.vlgmr.msra.gmra.mrb[4].mxu1 %v422_v63 }
 0x3be   :  { %v528_v1 = vpop.f32.mrb[4].mxu1 }
 0x3bf   :  { %v529_v2 = vadd.f32 %v572_v0, %v528_v1  ;;  %v695_v3 = vpop.f32.mrb[5].mxu1 }
 0x3c0   :  { %v531_v4 = vpop.f32.mrb[6].mxu1 }
 0x3c1   :  { %535 = vst [vmem:[%s974_s7] sm:$0xff] %v529_v2  ;;  %v532_v5 = vadd.f32 %v572_v0, %v531_v4  ;;  %v696_v6 = vpop.f32.mrb[7].mxu1 }
 0x3c3   :  { %536 = vst [vmem:[%s974_s7 + $0x8] sm:$0xff] %v532_v5 }
 0x3c4   :  { %541 = vsyncpa [#allocation3], 1 }
 0x3c5   :  { %542 = vsyncpa [#allocation5], 1 }

</bundles_post_ra>
